<compile_context>
chip_gen: v7x
topology: tpu7x:2x2x1
jax: 0.10.0
libtpu: 0.0.40
codegen_flags: <defaults>
</compile_context>

<pallas_src>
import functools

import jax
import jax.numpy as jnp
from jax.experimental import pallas as pl
from jax.experimental.pallas import tpu as pltpu

F_PAD = 128  # lane-dense padded feature width
SUBLANE = 8  # f32 sublane tile


def nxd_kernel(x_ref, w_ref, b_ref, tgt_ref, loss_ref, *, n_valid):
    # Fused RowParallelLinear + ColumnParallelLinear: logits = x @ W_fused + b_fused
    logits = jnp.dot(x_ref[...], w_ref[...],
                     preferred_element_type=jnp.float32) + b_ref[...]

    B, F = logits.shape
    col = jax.lax.broadcasted_iota(jnp.int32, (B, F), 1)

    # Mask padded lanes out of the softmax.
    logits = jnp.where(col < n_valid, logits, jnp.float32(-1e30))

    # parallel_cross_entropy: stable log-softmax + NLL against integer targets.
    m = jnp.max(logits, axis=-1, keepdims=True)
    lse = m + jnp.log(jnp.sum(jnp.exp(logits - m), axis=-1, keepdims=True))
    tgt_logit = jnp.sum(
        jnp.where(col == tgt_ref[...], logits, jnp.float32(0.0)),
        axis=-1, keepdims=True)
    loss = lse - tgt_logit                      # [B_pad, 1]

    # Lane-dense write-back: broadcast across the 128 lanes; wrapper slices col 0.
    loss_ref[...] = jnp.broadcast_to(loss, loss_ref.shape)


def nxd_forward(x, w1, b1, w2, b2, targets):
    """x: [B, 10] f32; w1, w2: [10, 10] (out, in) like torch Linear; b*: [10];
    targets: [B] int32. Returns per-example cross-entropy loss [B]."""
    B, F = x.shape
    B_pad = ((B + SUBLANE - 1) // SUBLANE) * SUBLANE

    # Fold the two affine layers (done once in XLA, outside the kernel):
    #   (x @ w1.T + b1) @ w2.T + b2 == x @ (w1.T @ w2.T) + (b1 @ w2.T + b2)
    w_fused = (w1.T.astype(jnp.float32) @ w2.T.astype(jnp.float32))    # [F_in, F_out]
    b_fused = (b1.astype(jnp.float32) @ w2.T.astype(jnp.float32)
               + b2.astype(jnp.float32))                               # [F_out]

    # Zero-pad batch to a sublane multiple and features to 128 lanes.
    x_pad = jnp.zeros((B_pad, F_PAD), jnp.float32).at[:B, :F].set(x.astype(jnp.float32))
    w_pad = jnp.zeros((F_PAD, F_PAD), jnp.float32).at[:F, :F].set(w_fused)
    b_pad = jnp.zeros((1, F_PAD), jnp.float32).at[0, :F].set(b_fused)
    tgt = jnp.zeros((B_pad, 1), jnp.int32).at[:B, 0].set(targets.astype(jnp.int32))

    out = pl.pallas_call(
        functools.partial(nxd_kernel, n_valid=F),
        out_shape=jax.ShapeDtypeStruct((B_pad, F_PAD), jnp.float32),
        in_specs=[pl.BlockSpec(memory_space=pltpu.MemorySpace.VMEM)] * 4,
        out_specs=pl.BlockSpec(memory_space=pltpu.MemorySpace.VMEM),
    )(x_pad, w_pad, b_pad, tgt)

    return out[:B, 0]


if __name__ == "__main__":
    key = jax.random.PRNGKey(0)
    k_x, k_w1, k_b1, k_w2, k_b2, k_t = jax.random.split(key, 6)

    B, F = 8, 10
    x = jax.random.normal(k_x, (B, F), dtype=jnp.float32)

    # Deterministic parameter init (torch-Linear-like uniform bound 1/sqrt(fan_in))
    bound = 1.0 / jnp.sqrt(jnp.float32(F))
    w1 = jax.random.uniform(k_w1, (F, F), jnp.float32, -bound, bound)  # rpl weight (out, in)
    b1 = jax.random.uniform(k_b1, (F,), jnp.float32, -bound, bound)
    w2 = jax.random.uniform(k_w2, (F, F), jnp.float32, -bound, bound)  # cpl weight (out, in)
    b2 = jax.random.uniform(k_b2, (F,), jnp.float32, -bound, bound)
    targets = jax.random.randint(k_t, (B,), 0, F, dtype=jnp.int32)

    loss = nxd_forward(x, w1, b1, w2, b2, targets)
    jax.block_until_ready(loss)

    # Reference check in plain JAX (unfused order of operations).
    h = x @ w1.T + b1
    h = h @ w2.T + b2
    ref = jax.nn.logsumexp(h, axis=-1) - h[jnp.arange(B), targets]
    assert jnp.allclose(loss, ref, atol=1e-5, rtol=1e-5), (loss, ref)

    print("KERNEL_OK")
</pallas_src>

<mosaic_0001>
module attributes {stable_mosaic.version = 11 : i64} {
  func.func @nxd_kernel(%arg0: memref<8x128xf32, #tpu.memory_space<vmem>>, %arg1: memref<128x128xf32, #tpu.memory_space<vmem>>, %arg2: memref<1x128xf32, #tpu.memory_space<vmem>>, %arg3: memref<8x1xi32, #tpu.memory_space<vmem>>, %arg4: memref<8x128xf32, #tpu.memory_space<vmem>>) attributes {dimension_semantics = [], scalar_prefetch = 0 : i64, scratch_operands = 0 : i64, tpu.core_type = #tpu.core_type<tc>} {
    %c0 = arith.constant 0 : index
    %c0_0 = arith.constant 0 : index
    %0 = vector.load %arg0[%c0, %c0_0] : memref<8x128xf32, #tpu.memory_space<vmem>>, vector<8x128xf32>
    %c0_1 = arith.constant 0 : index
    %c0_2 = arith.constant 0 : index
    %1 = vector.load %arg1[%c0_1, %c0_2] : memref<128x128xf32, #tpu.memory_space<vmem>>, vector<128x128xf32>
    %cst = arith.constant dense<0.000000e+00> : vector<8x128xf32>
    %2 = tpu.matmul %0, %1, %cst {dimension_numbers = #tpu.dot_dimension_numbers<[1], [0], [0], [1], [0, 0, 1, 1], [], []>} : vector<8x128xf32>, vector<128x128xf32>, vector<8x128xf32> -> vector<8x128xf32>
    %c0_3 = arith.constant 0 : index
    %c0_4 = arith.constant 0 : index
    %3 = vector.load %arg2[%c0_3, %c0_4] : memref<1x128xf32, #tpu.memory_space<vmem>>, vector<1x128xf32>
    %4 = vector.broadcast %3 : vector<1x128xf32> to vector<8x128xf32>
    %5 = arith.addf %2, %4 : vector<8x128xf32>
    %6 = tpu.iota {dimensions = array<i32: 1>} : vector<8x128xi32>
    %c10_i32 = arith.constant 10 : i32
    %7 = vector.broadcast %c10_i32 : i32 to vector<8x128xi32>
    %8 = arith.cmpi slt, %6, %7 : vector<8x128xi32>
    %cst_5 = arith.constant -1.000000e+30 : f32
    %9 = vector.broadcast %cst_5 : f32 to vector<8x128xf32>
    %10 = arith.select %8, %5, %9 : vector<8x128xi1>, vector<8x128xf32>
    %cst_6 = arith.constant dense<0xFF800000> : vector<8xf32>
    %11 = vector.multi_reduction <maximumf>, %10, %cst_6 [1] : vector<8x128xf32> to vector<8xf32>
    %12 = vector.shape_cast %11 : vector<8xf32> to vector<8x1xf32>
    %13 = vector.broadcast %12 : vector<8x1xf32> to vector<8x128xf32>
    %14 = arith.subf %10, %13 : vector<8x128xf32>
    %15 = math.exp %14 : vector<8x128xf32>
    %cst_7 = arith.constant dense<0.000000e+00> : vector<8xf32>
    %16 = vector.multi_reduction <add>, %15, %cst_7 [1] : vector<8x128xf32> to vector<8xf32>
    %17 = vector.shape_cast %16 : vector<8xf32> to vector<8x1xf32>
    %18 = math.log %17 : vector<8x1xf32>
    %19 = arith.addf %12, %18 : vector<8x1xf32>
    %c0_8 = arith.constant 0 : index
    %c0_9 = arith.constant 0 : index
    %20 = vector.load %arg3[%c0_8, %c0_9] : memref<8x1xi32, #tpu.memory_space<vmem>>, vector<8x1xi32>
    %21 = vector.broadcast %20 : vector<8x1xi32> to vector<8x128xi32>
    %22 = arith.cmpi eq, %6, %21 : vector<8x128xi32>
    %cst_10 = arith.constant 0.000000e+00 : f32
    %23 = vector.broadcast %cst_10 : f32 to vector<8x128xf32>
    %24 = arith.select %22, %10, %23 : vector<8x128xi1>, vector<8x128xf32>
    %cst_11 = arith.constant dense<0.000000e+00> : vector<8xf32>
    %25 = vector.multi_reduction <add>, %24, %cst_11 [1] : vector<8x128xf32> to vector<8xf32>
    %26 = vector.shape_cast %25 : vector<8xf32> to vector<8x1xf32>
    %27 = arith.subf %19, %26 : vector<8x1xf32>
    %28 = vector.shape_cast %27 : vector<8x1xf32> to vector<8x1xf32>
    %29 = vector.broadcast %28 : vector<8x1xf32> to vector<8x128xf32>
    %c0_12 = arith.constant 0 : index
    %c0_13 = arith.constant 0 : index
    %30 = vector.load %arg4[%c0_12, %c0_13] : memref<8x128xf32, #tpu.memory_space<vmem>>, vector<8x128xf32>
    tpu.vector_store %arg4[%c0_12, %c0_13], %29 {strides = array<i32>} : memref<8x128xf32, #tpu.memory_space<vmem>>, vector<8x128xf32>,
    return
  }
}

</mosaic_0001>

<bundles_post_ra>
// kernel: tpu_custom_call.1
= control target key start
LH: loop header
LB: loop body
LE: loop exit
PB: predicated region body
PF: predicated region fallthrough
CT: control target
= control target key end

     0   :  { %9 = vsyncpa [#allocation3], 0  ;;  %s369_s0 = inlined_call_operand.vmem [shape: f32[8,128], index: 0, kind: input, shape index: {}]   ;;  %s370_s1 = inlined_call_operand.hbm [shape: f32[128,128], index: 1, kind: input, shape index: {}]   ;;  %s371_s2 = inlined_call_operand.vmem [shape: f32[1,128], index: 2, kind: input, shape index: {}]   ;;  %s372_s3 = inlined_call_operand.vmem [shape: s32[8,1], index: 3, kind: input, shape index: {}]   ;;  %s373_s4 = inlined_call_operand.hbm [shape: f32[8,128], index: 4, kind: output, shape index: {}]  }
   0x1   :  { %10 = vsyncpa [#allocation4], 0  ;;  %s303_s15 = smov [#allocation2]   ;;  %s255_s19 = scalar_lea.hbm %s370_s1, 2048 }
   0x2   :  { %s18_s16 = sshll.u32 %s303_s15, 4  ;;  %p256_p0 = scmp.ne.s32.totalorder %s370_s1, %s255_s19  ;;  %s19_s16 = int_to_ptr.vmem [resolvable:$true] %s18_s16 }
   0x3   :  { %p259_p1 = scmp.lt.u32.totalorder %s255_s19, %s370_s1 }
   0x5   :  { %p261_p2 = pnand %p259_p1, %p256_p0 }
   0x7   :  { %264 = shalt.err (!%p261_p2)
}
   0x8   :  { %s265_s24 = scalar_lea.vmem %s19_s16, 2048  ;;  %p270_p4 = scmp.lt.s32.totalorder %s19_s16, %s19_s16 }
   0x9   :  { %p266_p3 = scmp.ne.s32.totalorder %s19_s16, %s265_s24  ;;  %p271_p5 = scmp.lt.s32.totalorder %s265_s24, %s265_s24 }
   0xb   :  { %p272_p6 = por %p271_p5, %p270_p4 }
   0xd   :  { %p273_p7 = pnand %p272_p6, %p266_p3 }
   0xf   :  { %276 = shalt.err (!%p273_p7)
}
  0x10   :  { %s304_s25 = smov 128   ;;  %s305_s26 = smov 8  }
  0x11   :  { %24 = dma.hbm_to_vmem [thread:$0]  %s370_s1, 2048, %s19_s16, [#allocation3], %s304_s25, %s304_s25, %s305_s26  }
  0x12   :  { %299 = dma.done.wait [#allocation3], 2048  }
  0x13   :  { %300 = vsyncadd [#allocation3], 4294965248  ;;  %v306_v0 = vmov 0.0|0.0   ;;  %vm307_vm0 = vmmov 0   ;;  %v308_v1 = vmov 0.0   ;;  %v33_v2 = vld [vmem:[#allocation2] sm:$0xff]  ;;  %v126_v28 = vlaneseq }
  0x14   :  { %218 = vmatprep.subr.bf16.mxu0 %v306_v0  ;;  %215 = vmatprep.mubr.msk.f32.mxu0 %vm307_vm0, %v308_v1  ;;  %v34_v3 = vld [vmem:[#allocation2 + $0x8] sm:$0xff]  ;;  %v35_v4 = vld [vmem:[#allocation2 + $0x10] sm:$0xff]  ;;  %v36_v6 = vld [vmem:[#allocation2 + $0x18] sm:$0xff]  ;;  %v309_v27 = vmov 0  }
  0x15   :  { %v219_v5 = vpack.c.bf16 %v34_v3, %v33_v2  ;;  %v222_v7 = vpack.c.bf16 %v36_v6, %v35_v4  ;;  %v37_v8 = vld [vmem:[#allocation2 + $0x20] sm:$0xff]  ;;  %v38_v9 = vld [vmem:[#allocation2 + $0x28] sm:$0xff]  ;;  %v39_v11 = vld [vmem:[#allocation2 + $0x30] sm:$0xff]  ;;  %250 = vset.pattern.permute.xlu0 %v309_v27  ;;  %v127_v29 = vand.u32 127, %v126_v28 }
  0x16   :  { %v225_v10 = vpack.c.bf16 %v38_v9, %v37_v8  ;;  %v40_v12 = vld [vmem:[#allocation2 + $0x38] sm:$0xff]  ;;  %v41_v14 = vld [vmem:[#allocation2 + $0x40] sm:$0xff]  ;;  %v42_v15 = vld [vmem:[#allocation2 + $0x48] sm:$0xff] }
  0x17   :  { %220 = vmatpush3.bf16.msra.mxu0 %v219_v5  ;;  %v228_v13 = vpack.c.bf16 %v40_v12, %v39_v11  ;;  %v231_v16 = vpack.c.bf16 %v42_v15, %v41_v14  ;;  %v43_v17 = vld [vmem:[#allocation2 + $0x50] sm:$0xff]  ;;  %v44_v18 = vld [vmem:[#allocation2 + $0x58] sm:$0xff]  ;;  %v45_v20 = vld [vmem:[#allocation2 + $0x60] sm:$0xff]  ;;  %vm128_vm1 = vcmp.lt.s32.totalorder %v127_v29, 10 }
  0x18   :  { %221 = vmatprep.subr.bf16.mxu0 %v306_v0  ;;  %v234_v19 = vpack.c.bf16 %v44_v18, %v43_v17  ;;  %v46_v21 = vld [vmem:[#allocation2 + $0x68] sm:$0xff]  ;;  %v47_v23 = vld [vmem:[#allocation2 + $0x70] sm:$0xff]  ;;  %v48_v24 = vld [vmem:[#allocation2 + $0x78] sm:$0xff] }
  0x19   :  { %v237_v22 = vpack.c.bf16 %v46_v21, %v45_v20  ;;  %v240_v25 = vpack.c.bf16 %v48_v24, %v47_v23  ;;  %v32_v26 = vld [vmem:[%s369_s0] sm:$0xff]  ;;  %s310_s0 = smov [#allocation5]  }
  0x1a   :  { %v165_v30 = vld [vmem:[%s371_s2] ss:$0 sm:$0xff]  ;;  %s156_s2 = sshll.u32 %s310_s0, 4  ;;  %s157_s2 = int_to_ptr.vmem [resolvable:$true] %s156_s2 }
  0x1b   :  { %223 = vmatpush3.bf16.msra.mxu0 %v222_v7  ;;  %v140_v35 = vld [vmem:[%s372_s3] sm:$0xff]  ;;  %s277_s3 = scalar_lea.vmem %s157_s2, 128  ;;  %p282_p9 = scmp.lt.s32.totalorder %s157_s2, %s157_s2 }
  0x1c   :  { %224 = vmatprep.subr.bf16.mxu0 %v306_v0  ;;  %p278_p8 = scmp.ne.s32.totalorder %s157_s2, %s277_s3  ;;  %p283_p10 = scmp.lt.s32.totalorder %s277_s3, %s277_s3 }
  0x1e   :  { %p284_p11 = por %p283_p10, %p282_p9 }
  0x1f   :  { %226 = vmatpush3.bf16.msra.mxu0 %v225_v10 }
  0x20   :  { %227 = vmatprep.subr.bf16.mxu0 %v306_v0  ;;  %p285_p12 = pnand %p284_p11, %p278_p8 }
  0x23   :  { %229 = vmatpush3.bf16.msra.mxu0 %v228_v13 }
  0x24   :  { %230 = vmatprep.subr.bf16.mxu0 %v306_v0 }
  0x27   :  { %232 = vmatpush3.bf16.msra.mxu0 %v231_v16 }
  0x28   :  { %233 = vmatprep.subr.bf16.mxu0 %v306_v0 }
  0x2b   :  { %235 = vmatpush3.bf16.msra.mxu0 %v234_v19 }
  0x2c   :  { %236 = vmatprep.subr.bf16.mxu0 %v306_v0 }
  0x2f   :  { %238 = vmatpush3.bf16.msra.mxu0 %v237_v22 }
  0x30   :  { %239 = vmatprep.subr.bf16.mxu0 %v306_v0 }
  0x33   :  { %241 = vmatpush3.bf16.msra.mxu0 %v240_v25 }
  0x36   :  { %216 = vmatmul.mubr.f32.vlgmr.msra.gmra.mrb[0].mxu0 %v32_v26 }
 0x109   :  { %v122_v31 = vpop.f32.mrb[0].mxu0 }
 0x10a   :  { %v123_v32 = vadd.f32 %v165_v30, %v122_v31  ;;  %v217_v33 = vpop.f32.mrb[1].mxu0 }
 0x10c   :  { %v129_v34 = vsel %vm128_vm1, %v123_v32, -1e+30 }
 0x10d   :  { %130 = vmax.xlane.f32.xlu0 %v129_v34 }
 0x123   :  { %142 = vperm.xlu0 %250, %v140_v35  }
 0x19a   :  { %v131_v36 = vpop.xlane.xlu0 %130 }
 0x19b   :  { %v132_v37 = vsub.f32 %v129_v34, %v131_v36 }
 0x19d   :  { %v133_v38 = vmul.f32 1.442695, %v132_v37 }
 0x19f   :  { %251 = vpow2.f32 %v133_v38 }
 0x1a2   :  { %v143_v39 = vpop.permute.xlu0 %142 }
 0x1a3   :  { %vm144_vm2 = vcmp.eq.s32.totalorder %v127_v29, %v143_v39 }
 0x1a4   :  { %v145_v41 = vsel %vm144_vm2, %v129_v34, 0.0 }
 0x1a9   :  { %v252_v40 = vpop.eup %251 }
 0x1aa   :  { %135 = vadd.xlane.f32.xlu1 %v252_v40 }
 0x1ae   :  { %146 = vadd.xlane.f32.xlu1 %v145_v41 }
 0x237   :  { %v136_v42 = vpop.xlane.xlu1 %135 }
 0x238   :  { %253 = vlog2.f32 %v136_v42 }
 0x23b   :  { %v147_v46 = vpop.xlane.xlu1 %146 }
 0x242   :  { %v254_v43 = vpop.eup %253 }
 0x243   :  { %v138_v44 = vmul.f32 0.6931472, %v254_v43 }
 0x245   :  { %v139_v45 = vadd.f32 %v138_v44, %v131_v36 }
 0x247   :  { %v148_v47 = vsub.f32 %v139_v45, %v147_v46 }
 0x249   :  { %149 = vst [vmem:[#allocation5] sm:$0xff] %v148_v47 }
 0x24a   :  { %288 = shalt.err (!%p285_p12)
}
 0x24b   :  { %s289_s10 = scalar_lea.hbm %s373_s4, 128 }
 0x24c   :  { %p290_p13 = scmp.ne.s32.totalorder %s373_s4, %s289_s10  ;;  %p293_p0 = scmp.lt.u32.totalorder %s289_s10, %s373_s4 }
 0x24e   :  { %p295_p1 = pnand %p293_p0, %p290_p13 }
 0x250   :  { %298 = shalt.err (!%p295_p1)
}
 0x251   :  { %159 = dma.vmem_to_hbm [thread:$0]  %s157_s2, 128, %s373_s4, [#allocation4]  }
 0x252   :  { %301 = dma.done.wait [#allocation4], 128  }
 0x253   :  { %302 = vsyncadd [#allocation4], 4294967168 }
 0x254   :  { %163 = vsyncpa [#allocation3], 1 }
 0x255   :  { %164 = vsyncpa [#allocation4], 1 }

</bundles_post_ra>
